<compile_context>
chip_gen: v7x
topology: tpu7x:2x2x1
jax: 0.10.0
libtpu: 0.0.40
codegen_flags: <defaults>
</compile_context>

<pallas_src>
import functools

import jax
import jax.numpy as jnp
import numpy as np
from jax.experimental import pallas as pl
from jax.experimental.pallas import tpu as pltpu


def _layer_norm_kernel(x_ref, g_ref, b_ref, o_ref, *, eps, inv_c):
    """x_ref: (NB, C, T) tile -- channels on sublanes, spatial on lanes."""
    x = x_ref[...].astype(jnp.float32)                      # (NB, C, T), f32 math
    mean = jnp.sum(x, axis=1, keepdims=True) * inv_c        # (NB, 1, T)
    xc = x - mean
    var = jnp.sum(xc * xc, axis=1, keepdims=True) * inv_c   # two-pass centered variance
    denom = jnp.sqrt(var) + eps                             # eps added to std (matches reference)
    inv = pl.reciprocal(denom, approx=True)                 # EUP slot, row-wise (1/C of elements)
    inv = inv * (2.0 - denom * inv)                         # Newton step 1
    inv = inv * (2.0 - denom * inv)                         # Newton step 2 -> full f32 accuracy
    g = g_ref[...].astype(jnp.float32)                      # (1, C, 1)
    b = b_ref[...].astype(jnp.float32)                      # (1, C, 1)
    o_ref[...] = (xc * inv * g + b).astype(o_ref.dtype)


def _divisors(n):
    return [d for d in range(1, n + 1) if n % d == 0]


def _choose_blocking(B, C, HW_p, target_block_bytes, min_steps=4):
    """Pick (NB, T): NB batch rows and T spatial lanes per block.

    Maximizes bytes/step subject to the byte target, preferring choices that
    leave at least `min_steps` grid steps (v7x dual-TC + pipeline overlap).
    T is any multiple-of-128 divisor of HW_p (HW_p is already a multiple of 128).
    """
    c_pad = ((C + 7) // 8) * 8                 # channels are padded to 8 sublanes in VMEM
    t_opts = [m * 128 for m in _divisors(HW_p // 128)]
    best = None
    for nb in _divisors(B):
        for t in t_opts:
            blk_bytes = nb * c_pad * t * 4     # f32-resident temps dominate the footprint
            if blk_bytes > target_block_bytes:
                continue
            steps = (B // nb) * (HW_p // t)
            key = (min(steps, min_steps), blk_bytes)
            if best is None or key > best[0]:
                best = (key, nb, t)
    if best is None:                           # pathologically large C: minimal legal block
        return 1, 128
    _, nb, t = best
    return nb, t


def _vmem_capacity_bytes():
    try:
        return int(pltpu.get_tpu_info().vmem_capacity_bytes)
    except Exception:
        return 64 * 1024 * 1024                # conservative fallback (v7x-sized)


def layer_norm(x, g, b, eps=1e-5):
    """x: (B, C, H, W); g, b broadcastable to (1, C, 1, 1). Output matches x.dtype."""
    B, C, H, W = x.shape
    HW = H * W
    x2 = x.reshape(B, C, HW)                   # keep input dtype (bf16 stays bf16 in HBM)
    g2 = jnp.reshape(g, (1, C, 1)).astype(jnp.float32)
    b2 = jnp.reshape(b, (1, C, 1)).astype(jnp.float32)

    # Lane-dense spatial axis: pad ragged H*W up to a multiple of 128.
    pad = (-HW) % 128
    if pad:
        x2 = jnp.pad(x2, ((0, 0), (0, 0), (0, pad)))
    HW_p = HW + pad

    # Generation-aware budgets.
    vmem_cap = _vmem_capacity_bytes()
    vmem_limit = min(int(vmem_cap * 0.75), 96 * 1024 * 1024)
    target_block_bytes = (2 if vmem_cap <= 64 * 1024 * 1024 else 4) * 1024 * 1024

    nb, t = _choose_blocking(B, C, HW_p, target_block_bytes)
    grid = (B // nb, HW_p // t)

    elt = jnp.dtype(x.dtype).itemsize
    cost = pl.CostEstimate(
        flops=7 * B * C * HW_p,
        transcendentals=2 * B * HW_p,
        bytes_accessed=2 * B * C * HW_p * elt + 2 * C * 4,
    )

    out = pl.pallas_call(
        functools.partial(_layer_norm_kernel, eps=float(eps), inv_c=1.0 / C),
        out_shape=jax.ShapeDtypeStruct((B, C, HW_p), x.dtype),
        grid=grid,
        in_specs=[
            pl.BlockSpec((nb, C, t), lambda bi, si: (bi, 0, si)),   # x tile
            pl.BlockSpec((1, C, 1), lambda bi, si: (0, 0, 0)),      # g (full extent, resident)
            pl.BlockSpec((1, C, 1), lambda bi, si: (0, 0, 0)),      # b
        ],
        out_specs=pl.BlockSpec((nb, C, t), lambda bi, si: (bi, 0, si)),
        compiler_params=pltpu.CompilerParams(
            dimension_semantics=("parallel", "parallel"),
            vmem_limit_bytes=vmem_limit,
        ),
        cost_estimate=cost,
    )(x2, g2, b2)

    if pad:
        out = out[:, :, :HW]
    return out.reshape(B, C, H, W)


def layer_norm_ref(x, g, b, eps=1e-5):
    """Pure-JAX reference mirroring the PyTorch forward."""
    mean = jnp.mean(x, axis=1, keepdims=True)
    var = jnp.mean((x - mean) ** 2, axis=1, keepdims=True)   # unbiased=False
    std = jnp.sqrt(var)
    return (x - mean) / (std + eps) * g + b


if __name__ == "__main__":
    B, C, H, W = 2, 4, 16, 16
    key = jax.random.PRNGKey(0)
    kx, kg, kb = jax.random.split(key, 3)
    x = jax.random.normal(kx, (B, C, H, W), jnp.float32)
    # Module init is g=ones, b=zeros; perturb deterministically so the affine path is exercised.
    g = 1.0 + 0.1 * jax.random.normal(kg, (1, C, 1, 1), jnp.float32)
    b = 0.1 * jax.random.normal(kb, (1, C, 1, 1), jnp.float32)

    fwd = jax.jit(layer_norm)
    y = jax.block_until_ready(fwd(x, g, b))
    y_ref = layer_norm_ref(x, g, b)

    assert y.shape == (B, C, H, W), y.shape
    np.testing.assert_allclose(np.asarray(y), np.asarray(y_ref), rtol=1e-5, atol=1e-5)
    print("KERNEL_OK")
</pallas_src>

<mosaic_0001>
module attributes {stable_mosaic.version = 11 : i64} {
  func.func @_layer_norm_kernel(%arg0: i32, %arg1: i32, %arg2: memref<1x4x128xf32, #tpu.memory_space<vmem>>, %arg3: memref<1x4x1xf32, #tpu.memory_space<vmem>>, %arg4: memref<1x4x1xf32, #tpu.memory_space<vmem>>, %arg5: memref<1x4x128xf32, #tpu.memory_space<vmem>>) attributes {dimension_semantics = [#tpu.dimension_semantics<parallel>, #tpu.dimension_semantics<parallel>], iteration_bounds = array<i64: 2, 2>, scalar_prefetch = 0 : i64, scratch_operands = 0 : i64, tpu.core_type = #tpu.core_type<tc>, window_params = [{transform_indices = @transform_0, window_bounds = array<i64: 1, 4, 128>}, {pipeline_mode = #tpu.pipeline_mode<synchronous>, transform_indices = @transform_1, window_bounds = array<i64: 1, 4, 1>}, {pipeline_mode = #tpu.pipeline_mode<synchronous>, transform_indices = @transform_2, window_bounds = array<i64: 1, 4, 1>}, {transform_indices = @transform_3, window_bounds = array<i64: 1, 4, 128>}]} {
    %c0 = arith.constant 0 : index
    %c0_0 = arith.constant 0 : index
    %c0_1 = arith.constant 0 : index
    %0 = vector.load %arg2[%c0, %c0_0, %c0_1] : memref<1x4x128xf32, #tpu.memory_space<vmem>>, vector<1x4x128xf32>
    %cst = arith.constant dense<0.000000e+00> : vector<1x128xf32>
    %1 = vector.multi_reduction <add>, %0, %cst [1] : vector<1x4x128xf32> to vector<1x128xf32>
    %2 = vector.shape_cast %1 : vector<1x128xf32> to vector<1x1x128xf32>
    %cst_2 = arith.constant 2.500000e-01 : f32
    %3 = vector.broadcast %cst_2 : f32 to vector<1x1x128xf32>
    %4 = arith.mulf %2, %3 : vector<1x1x128xf32>
    %5 = vector.broadcast %4 : vector<1x1x128xf32> to vector<1x4x128xf32>
    %6 = arith.subf %0, %5 : vector<1x4x128xf32>
    %7 = arith.mulf %6, %6 : vector<1x4x128xf32>
    %cst_3 = arith.constant dense<0.000000e+00> : vector<1x128xf32>
    %8 = vector.multi_reduction <add>, %7, %cst_3 [1] : vector<1x4x128xf32> to vector<1x128xf32>
    %9 = vector.shape_cast %8 : vector<1x128xf32> to vector<1x1x128xf32>
    %cst_4 = arith.constant 2.500000e-01 : f32
    %10 = vector.broadcast %cst_4 : f32 to vector<1x1x128xf32>
    %11 = arith.mulf %9, %10 : vector<1x1x128xf32>
    %12 = math.sqrt %11 : vector<1x1x128xf32>
    %cst_5 = arith.constant 9.99999974E-6 : f32
    %13 = vector.broadcast %cst_5 : f32 to vector<1x1x128xf32>
    %14 = arith.addf %12, %13 : vector<1x1x128xf32>
    %15 = tpu.reciprocal %14 {approx = true} : vector<1x1x128xf32> -> vector<1x1x128xf32>
    %16 = arith.mulf %14, %15 : vector<1x1x128xf32>
    %cst_6 = arith.constant 2.000000e+00 : f32
    %17 = vector.broadcast %cst_6 : f32 to vector<1x1x128xf32>
    %18 = arith.subf %17, %16 : vector<1x1x128xf32>
    %19 = arith.mulf %15, %18 : vector<1x1x128xf32>
    %20 = arith.mulf %14, %19 : vector<1x1x128xf32>
    %cst_7 = arith.constant 2.000000e+00 : f32
    %21 = vector.broadcast %cst_7 : f32 to vector<1x1x128xf32>
    %22 = arith.subf %21, %20 : vector<1x1x128xf32>
    %23 = arith.mulf %19, %22 : vector<1x1x128xf32>
    %c0_8 = arith.constant 0 : index
    %c0_9 = arith.constant 0 : index
    %c0_10 = arith.constant 0 : index
    %24 = vector.load %arg3[%c0_8, %c0_9, %c0_10] : memref<1x4x1xf32, #tpu.memory_space<vmem>>, vector<1x4x1xf32>
    %c0_11 = arith.constant 0 : index
    %c0_12 = arith.constant 0 : index
    %c0_13 = arith.constant 0 : index
    %25 = vector.load %arg4[%c0_11, %c0_12, %c0_13] : memref<1x4x1xf32, #tpu.memory_space<vmem>>, vector<1x4x1xf32>
    %26 = vector.broadcast %23 : vector<1x1x128xf32> to vector<1x4x128xf32>
    %27 = arith.mulf %6, %26 : vector<1x4x128xf32>
    %28 = vector.broadcast %24 : vector<1x4x1xf32> to vector<1x4x128xf32>
    %29 = arith.mulf %27, %28 : vector<1x4x128xf32>
    %30 = vector.broadcast %25 : vector<1x4x1xf32> to vector<1x4x128xf32>
    %31 = arith.addf %29, %30 : vector<1x4x128xf32>
    %c0_14 = arith.constant 0 : index
    %c0_15 = arith.constant 0 : index
    %c0_16 = arith.constant 0 : index
    %32 = vector.load %arg5[%c0_14, %c0_15, %c0_16] : memref<1x4x128xf32, #tpu.memory_space<vmem>>, vector<1x4x128xf32>
    tpu.vector_store %arg5[%c0_14, %c0_15, %c0_16], %31 {strides = array<i32>} : memref<1x4x128xf32, #tpu.memory_space<vmem>>, vector<1x4x128xf32>,
    return
  }
  func.func @transform_0(%arg0: i32, %arg1: i32) -> (i32, i32, i32) {
    %c0_i32 = arith.constant 0 : i32
    %c0_i32_0 = arith.constant 0 : i32
    return %arg0, %c0_i32, %arg1 : i32, i32, i32
  }
  func.func @transform_1(%arg0: i32, %arg1: i32) -> (i32, i32, i32) {
    %c0_i32 = arith.constant 0 : i32
    %c0_i32_0 = arith.constant 0 : i32
    %c0_i32_1 = arith.constant 0 : i32
    %c0_i32_2 = arith.constant 0 : i32
    return %c0_i32, %c0_i32_0, %c0_i32_1 : i32, i32, i32
  }
  func.func @transform_2(%arg0: i32, %arg1: i32) -> (i32, i32, i32) {
    %c0_i32 = arith.constant 0 : i32
    %c0_i32_0 = arith.constant 0 : i32
    %c0_i32_1 = arith.constant 0 : i32
    %c0_i32_2 = arith.constant 0 : i32
    return %c0_i32, %c0_i32_0, %c0_i32_1 : i32, i32, i32
  }
  func.func @transform_3(%arg0: i32, %arg1: i32) -> (i32, i32, i32) {
    %c0_i32 = arith.constant 0 : i32
    %c0_i32_0 = arith.constant 0 : i32
    return %arg0, %c0_i32, %arg1 : i32, i32, i32
  }
}

</mosaic_0001>

<bundles_post_ra>
// kernel: layer_norm.1
= control target key start
LH: loop header
LB: loop body
LE: loop exit
PB: predicated region body
PF: predicated region fallthrough
CT: control target
= control target key end

     0   :  { %s457_s12 = smov 0   ;;  %s459_s13 = smov 0   ;;  %s521_s0 = inlined_call_operand.vmem [shape: f32[2,4,256], index: 0, kind: input, shape index: {}]   ;;  %s522_s1 = inlined_call_operand.vmem [shape: f32[1,4,1], index: 1, kind: input, shape index: {}]   ;;  %s523_s2 = inlined_call_operand.vmem [shape: f32[1,4,1], index: 2, kind: input, shape index: {}]   ;;  %s524_s3 = inlined_call_operand.vmem [shape: f32[2,4,256], index: 3, kind: output, shape index: {}]  }
   0x1   :  { %s461_s14 = smov 0   ;;  %s463_s15 = smov 0  }
   0x2   :  { %s465_s16 = smov 0  }
   0x3 LB: > { %s22_s17 = sadd.s32 1, %s426_s14  ;;  %s25_s18 = sadd.s32 1, %s430_s15  ;;  %s434_s16 = sphi %s465_s16, %s13_s16   ;;  %s430_s15 = sphi %s463_s15, %s528_s15   ;;  %s426_s14 = sphi %s461_s14, %s527_s14   ;;  %s422_s13 = sphi %s459_s13, %s526_s13   ;;  %s418_s12 = sphi %s457_s12, %s525_s12  }
   0x4   : > { %p23_p0 = scmp.ge.s32.totalorder %s22_s17, 2  ;;  %p343_p1 = scmp.ge.s32.totalorder %s434_s16, 1 }
   0x5   : > { %p156_p2 = scmp.lt.s32.totalorder %s434_s16, 5 }
   0x6   : > { %s530_s17 = smov (%p23_p0, %s22_s17), 0  ;;  %s532_s18 = smov (!%p23_p0, %s25_s18), %s430_s15 }
   0x7   : > { %p157_p3 = pnand %p343_p1, %p156_p2  ;;  %p27_p4 = scmp.ge.s32.totalorder %s532_s18, 2 }
   0x8   : > { %v237_v0 = vld [vmem:[%s522_s1] sm:$0xf] (!%p157_p3)  ;;  %p186_p5 = scmp.lt.s32.totalorder (!%p157_p3), %s422_s13, 1  ;;  %v436_v1 = vmov (!%p157_p3), 0   ;;  %p188_p6 = scmp.lt.s32.totalorder (!%p157_p3), %s418_s12, 1  ;;  %vm203_vm0 = vcmask (!%p157_p3), 1043456  }
   0x9   : > { %s534_s18 = smov (%p27_p4, %s532_s18), 0  ;;  %160 = sbr.rel (%p157_p3) target bundleno = 146 (0x92), region = 32 }
   0xa   : > { %391 = vset.pattern.permute.xlu0 (!%p157_p3), %v436_v1  ;;  %v238_v2 = vld [vmem:[%s523_s2] sm:$0xf] (!%p157_p3) }
   0xb   : > { %242 = vperm.xlu0 (!%p157_p3), %391, %v237_v0  }
   0xf   : > { %248 = vperm.xlu0 (!%p157_p3), %391, %v238_v2  }
  0x10   : > { %s536_s13 = smov (!%p186_p5, %s422_s13), 1  ;;  %s538_s12 = smov (!%p188_p6, %s418_s12), 1 }
  0x11   : > { %s344_s23 = sshll.u32 %s536_s13, 1 }
  0x12   : > { %s493_s24 = sadd.s32 %s344_s23, %s538_s12 }
  0x13   : > { %s345_s25 = sshll.u32 %s493_s24, 2 }
  0x14   : > { %s193_s28 = scalar_lea.vmem %s521_s0, %s345_s25  ;;  %s201_s4 = scalar_lea.vmem %s524_s3, %s345_s25 }
  0x15   : > { %v202_v3 = vld [vmem:[%s193_s28] sm:$0xf] }
  0x16   : > { %v204_v4 = vsel %vm203_vm0, %v202_v3, 0.0 }
  0x17   : > { %v205_v5 = vrot.slane %v204_v4, 4 }
  0x19   : > { %v206_v6 = vadd.f32 %v205_v5, %v204_v4 }
  0x1b   : > { %v207_v7 = vrot.slane %v206_v6, 2 }
  0x1d   : > { %v208_v8 = vadd.f32 %v207_v7, %v206_v6 }
  0x1f   : > { %v209_v9 = vrot.slane %v208_v8, 1 }
  0x21   : > { %v210_v10 = vadd.f32 %v209_v9, %v208_v8 }
  0x23   : > { %v211_v11 = vmul.f32 0.25, %v210_v10 }
  0x25   : > { %v212_v12 = vsub.f32 %v202_v3, %v211_v11 }
  0x27   : > { %v213_v13 = vmul.f32 %v212_v12, %v212_v12 }
  0x29   : > { %v214_v14 = vsel %vm203_vm0, %v213_v13, 0.0 }
  0x2a   : > { %v215_v15 = vrot.slane %v214_v14, 4 }
  0x2c   : > { %v216_v16 = vadd.f32 %v215_v15, %v214_v14 }
  0x2e   : > { %v217_v17 = vrot.slane %v216_v16, 2 }
  0x30   : > { %v218_v18 = vadd.f32 %v217_v17, %v216_v16 }
  0x32   : > { %v219_v19 = vrot.slane %v218_v18, 1 }
  0x34   : > { %v220_v20 = vadd.f32 %v219_v19, %v218_v18 }
  0x36   : > { %v221_v21 = vmul.f32 0.25, %v220_v20 }
  0x38   : > { %392 = vrsqrt.f32 %v221_v21  ;;  %vm224_vm1 = vcmp.eq.f32.partialorder %v221_v21, inf  ;;  %v227_v24 = vand.u32 2147483648, %v221_v21  ;;  %vm226_vm2 = vcmp.eq.f32.partialorder %v221_v21, 0.0 }
  0x42   : > { %v393_v22 = vpop.eup %392 }
  0x43   : > { %v223_v23 = vmul.f32 %v393_v22, %v221_v21 }
  0x45   : > { %v225_v25 = vsel %vm224_vm1, %v221_v21, %v223_v23 }
  0x46   : > { %v228_v26 = vsel %vm226_vm2, %v227_v24, %v225_v25 }
  0x47   : > { %v229_v27 = vadd.f32 1e-05, %v228_v26 }
  0x49   : > { %394 = vrcp.f32 %v229_v27 }
  0x53   : > { %v395_v28 = vpop.eup %394 }
  0x54   : > { %v231_v29 = vmul.f32 %v395_v28, %v229_v27 }
  0x56   : > { %v232_v30 = vsub.f32 2.0, %v231_v29 }
  0x58   : > { %v233_v31 = vmul.f32 %v395_v28, %v232_v30 }
  0x5a   : > { %v234_v32 = vmul.f32 %v233_v31, %v229_v27 }
  0x5c   : > { %v235_v33 = vsub.f32 2.0, %v234_v32 }
  0x5e   : > { %v236_v34 = vmul.f32 %v235_v33, %v233_v31 }
  0x60   : > { %v239_v35 = vmul.f32 %v236_v34, %v212_v12 }
  0x8a   : > { %v243_v36 = vpop.permute.xlu0 %242 }
  0x8b   : > { %v245_v37 = vmul.f32 %v243_v36, %v239_v35 }
  0x8e   : > { %v249_v38 = vpop.permute.xlu0 %248 }
  0x8f   : > { %v251_v39 = vadd.f32 %v249_v38, %v245_v37 }
  0x91   : > { %252 = vst [vmem:[%s201_s4] sm:$0xf] %v251_v39 }
  0x92 PF: > { %s13_s16 = sadd.s32 1, %s434_s16   ;;  %s525_s12 = smov %s426_s14 }
  0x93   : > { %p10_p7 = scmp.ge.s32.totalorder %s13_s16, 6   ;;  %s526_s13 = smov %s430_s15 }
  0x94   : > { %s527_s14 = smov %s530_s17  ;;  %s528_s15 = smov %s534_s18 }
  0x95   :  { %12 = sbr.rel (!%p10_p7) target bundleno = 3 (0x3), region = 62 }

</bundles_post_ra>
